<compile_context>
chip_gen: v6e
topology: v6e:2x2x1
jax: 0.10.0
libtpu: 0.0.40
codegen_flags: <defaults>
</compile_context>

<pallas_src>
import jax
import jax.numpy as jnp
from jax.experimental import pallas as pl
from jax.experimental.pallas import tpu as pltpu

LANE = 128       # TPU lane width
SUB_F32 = 8      # f32 sublane tile
SUB_BF16 = 16    # bf16 sublane tile (packed)


# ----------------------------- Pallas kernel --------------------------------
def dbn_kernel(x_ref, w1_ref, b1_ref, w2_ref, b2_ref,
               wc_ref, bc_ref, wo_ref, bo_ref, out_ref):
    # Cast x on-chip (VPU) so the wrapper never needs an extra HBM pass just
    # to change dtype.  No-op if x was already stored bf16 (padded path).
    x = x_ref[...].astype(jnp.bfloat16)

    # RBM layer 1: sigmoid(x @ W1 + b1) -- bf16 MXU, f32 accumulate,
    # bias add + activation in f32.
    h = jnp.dot(x, w1_ref[...], preferred_element_type=jnp.float32)
    h = jax.nn.sigmoid(h + b1_ref[...]).astype(jnp.bfloat16)

    # NOTE on padding correctness: padded hidden lanes evaluate to
    # sigmoid(0) = 0.5, but the *rows* of the next weight matrix that they
    # multiply are zero-padded, so they contribute nothing.  Keep that
    # invariant if the padding scheme is ever changed.

    # RBM layer 2: sigmoid(h @ W2 + b2)
    h = jnp.dot(h, w2_ref[...], preferred_element_type=jnp.float32)
    h = jax.nn.sigmoid(h + b2_ref[...]).astype(jnp.bfloat16)

    # Classifier hidden layer: relu(h @ Wc + bc)
    h = jnp.dot(h, wc_ref[...], preferred_element_type=jnp.float32)
    h = jnp.maximum(h + bc_ref[...], 0.0).astype(jnp.bfloat16)

    # Output layer (logits, no activation) -- lane-dense (128-padded) store.
    out_ref[...] = jnp.dot(h, wo_ref[...],
                           preferred_element_type=jnp.float32) + bo_ref[...]


# ----------------------------- Helpers ---------------------------------------
def _round_up(n, m):
    return ((n + m - 1) // m) * m


# ----------------------------- Wrapper ---------------------------------------
def dbn_forward(x_nchw, params, *, max_batch_tile=512):
    """Run the fused DBN forward. x_nchw: [B, C, H, W] float32."""
    B = x_nchw.shape[0]
    x = x_nchw.reshape(B, -1)                       # same as torch .view(B, -1)
    D0 = x.shape[1]

    (w1, b1), (w2, b2), (wc, bc), (wo, bo) = params
    OUT = wo.shape[1]

    # ---- pad feature dims to lane (128) multiples; cast weights to bf16 -----
    # Zero row/column padding keeps the math exact: padded activation lanes
    # only ever multiply zero weight rows, and padded outputs are sliced off.
    def prep_w(w):
        pr, pc = (-w.shape[0]) % LANE, (-w.shape[1]) % LANE
        return jnp.pad(w, ((0, pr), (0, pc))).astype(jnp.bfloat16)

    def prep_b(b):
        return jnp.pad(b, ((0, 0), (0, (-b.shape[1]) % LANE))).astype(jnp.float32)

    w1p, w2p, wcp, wop = (prep_w(w) for w in (w1, w2, wc, wo))
    b1p, b2p, bcp, bop = (prep_b(b) for b in (b1, b2, bc, bo))

    D0p, H1p = w1p.shape
    H2p = w2p.shape[1]
    HCp = wcp.shape[1]
    OUTp = wop.shape[1]

    # ---- choose the batch tile ----------------------------------------------
    # Large B: 128-multiples up to max_batch_tile, but capped so the grid has
    # >= 2 steps (both TensorCores engage on v7x).  Tiny B: sublane-aligned
    # tile only -- do not over-pad to 128 rows.
    if B > LANE:
        n128 = _round_up(B, LANE) // LANE
        bt = max(LANE, min(max_batch_tile, LANE * max(1, n128 // 2)))
    else:
        bt = _round_up(B, SUB_F32)

    # ---- x path: avoid any extra wrapper-side HBM pass when possible --------
    if B % bt == 0 and D0 == D0p:
        # Shapes already aligned: stream x straight through as f32 and cast
        # inside the kernel.  Zero extra HBM traffic in the wrapper.
        xin = x.astype(jnp.float32)
        Bp = B
    else:
        # Padding needed: fuse cast + pad into one pass, storing bf16 so the
        # extra pass writes half the bytes.  (If x is reused across calls,
        # persist this padded bf16 copy instead of rebuilding it each time.)
        if B <= LANE:
            bt = _round_up(B, SUB_BF16)            # bf16 sublane packing
        Bp = _round_up(B, bt)
        xin = jnp.pad(x.astype(jnp.bfloat16), ((0, Bp - B), (0, D0p - D0)))

    grid = (Bp // bt,)
    full = lambda i: (0, 0)            # weights / biases: same block every step
    row = lambda i: (i, 0)             # batch-tiled blocks

    out_padded = pl.pallas_call(
        dbn_kernel,
        out_shape=jax.ShapeDtypeStruct((Bp, OUTp), jnp.float32),
        grid_spec=pltpu.PrefetchScalarGridSpec(
            num_scalar_prefetch=0,
            grid=grid,
            in_specs=[
                pl.BlockSpec((bt, D0p), row),      # x tile (f32 or bf16)
                pl.BlockSpec((D0p, H1p), full),    # W1 (bf16)
                pl.BlockSpec((1, H1p), full),      # b1 (f32)
                pl.BlockSpec((H1p, H2p), full),    # W2 (bf16)
                pl.BlockSpec((1, H2p), full),      # b2 (f32)
                pl.BlockSpec((H2p, HCp), full),    # Wc (bf16)
                pl.BlockSpec((1, HCp), full),      # bc (f32)
                pl.BlockSpec((HCp, OUTp), full),   # Wo (bf16)
                pl.BlockSpec((1, OUTp), full),     # bo (f32)
            ],
            out_specs=pl.BlockSpec((bt, OUTp), row),
        ),
        compiler_params=pltpu.CompilerParams(
            dimension_semantics=("parallel",)),
    )(xin, w1p, b1p, w2p, b2p, wcp, bcp, wop, bop)

    return out_padded[:B, :OUT]


# ------------------------- Deterministic parameter init ----------------------
def make_params(key, input_dim, rbm_hidden_dims, classifier_hidden, output_dim):
    """Mirror the PyTorch init: xavier_normal for sigmoid RBM layers,
    kaiming_normal (relu) for the ReLU classifier layers. Biases = 0.
    Weights are returned as [in, out] (transpose of nn.Linear.weight)."""
    params = []
    dims = [input_dim] + list(rbm_hidden_dims)
    # RBM layers (Sigmoid -> xavier_normal: std = sqrt(2 / (fan_in + fan_out)))
    for i in range(len(rbm_hidden_dims)):
        key, k = jax.random.split(key)
        fan_in, fan_out = dims[i], dims[i + 1]
        std = (2.0 / (fan_in + fan_out)) ** 0.5
        w = jax.random.normal(k, (fan_in, fan_out), jnp.float32) * std
        b = jnp.zeros((1, fan_out), jnp.float32)
        params.append((w, b))
    # Classifier layers (ReLU -> kaiming_normal: std = sqrt(2 / fan_in))
    cdims = [dims[-1]] + list(classifier_hidden) + [output_dim]
    for i in range(len(cdims) - 1):
        key, k = jax.random.split(key)
        fan_in, fan_out = cdims[i], cdims[i + 1]
        std = (2.0 / fan_in) ** 0.5
        w = jax.random.normal(k, (fan_in, fan_out), jnp.float32) * std
        b = jnp.zeros((1, fan_out), jnp.float32)
        params.append((w, b))
    return params


# ------------------------- Pure-JAX references --------------------------------
def dbn_reference_f32(x_nchw, params):
    x = x_nchw.reshape(x_nchw.shape[0], -1)
    (w1, b1), (w2, b2), (wc, bc), (wo, bo) = params
    h = jax.nn.sigmoid(x @ w1 + b1)
    h = jax.nn.sigmoid(h @ w2 + b2)
    h = jnp.maximum(h @ wc + bc, 0.0)
    return h @ wo + bo


def dbn_reference_bf16(x_nchw, params):
    """Reference with the same bf16-matmul / f32-accumulate numerics as the
    kernel (bias add and activations in f32)."""
    def mm(a, w):
        return jnp.dot(a.astype(jnp.bfloat16), w.astype(jnp.bfloat16),
                       preferred_element_type=jnp.float32)
    x = x_nchw.reshape(x_nchw.shape[0], -1)
    (w1, b1), (w2, b2), (wc, bc), (wo, bo) = params
    h = jax.nn.sigmoid(mm(x, w1) + b1)
    h = jax.nn.sigmoid(mm(h, w2) + b2)
    h = jnp.maximum(mm(h, wc) + bc, 0.0)
    return mm(h, wo) + bo


# ------------------------------- Main -----------------------------------------
if __name__ == "__main__":
    key = jax.random.PRNGKey(0)

    # Small shapes consistent with the module:
    #   x: [B=8, C=4, H=16, W=16]  -> input_dim = 1024
    #   rbm_hidden_dims = [256, 128], classifier_hidden_layers = [64], output_dim = 10
    B, C, H, W = 8, 4, 16, 16
    input_dim = C * H * W
    rbm_hidden_dims = [256, 128]
    classifier_hidden = [64]
    output_dim = 10

    key, kx = jax.random.split(key)
    x = jax.random.normal(kx, (B, C, H, W), jnp.float32)

    params = make_params(key, input_dim, rbm_hidden_dims,
                         classifier_hidden, output_dim)

    out = dbn_forward(x, params)
    out = jax.block_until_ready(out)
    assert out.shape == (B, output_dim)

    # Exact-numerics reference (bf16 matmuls, f32 accumulation) -> tight check.
    ref_bf16 = dbn_reference_bf16(x, params)
    assert jnp.allclose(out, ref_bf16, atol=2e-3, rtol=2e-3), \
        "mismatch vs bf16-matmul reference"

    # Full-precision reference -> loose sanity check (bf16 weight rounding).
    ref_f32 = dbn_reference_f32(x, params)
    assert jnp.allclose(out, ref_f32, atol=1e-1, rtol=1e-1), \
        "mismatch vs f32 reference"

    print("KERNEL_OK")
</pallas_src>

<mosaic_0001>
module attributes {stable_mosaic.version = 11 : i64} {
  func.func @dbn_kernel(%arg0: i32, %arg1: memref<8x1024xf32, #tpu.memory_space<vmem>>, %arg2: memref<1024x256xbf16, #tpu.memory_space<vmem>>, %arg3: memref<1x256xf32, #tpu.memory_space<vmem>>, %arg4: memref<256x128xbf16, #tpu.memory_space<vmem>>, %arg5: memref<1x128xf32, #tpu.memory_space<vmem>>, %arg6: memref<128x128xbf16, #tpu.memory_space<vmem>>, %arg7: memref<1x128xf32, #tpu.memory_space<vmem>>, %arg8: memref<128x128xbf16, #tpu.memory_space<vmem>>, %arg9: memref<1x128xf32, #tpu.memory_space<vmem>>, %arg10: memref<8x128xf32, #tpu.memory_space<vmem>>) attributes {dimension_semantics = [#tpu.dimension_semantics<parallel>], iteration_bounds = array<i64: 1>, scalar_prefetch = 0 : i64, scratch_operands = 0 : i64, tpu.core_type = #tpu.core_type<tc>, window_params = [{transform_indices = @transform_0, window_bounds = array<i64: 8, 1024>}, {pipeline_mode = #tpu.pipeline_mode<synchronous>, transform_indices = @transform_1, window_bounds = array<i64: 1024, 256>}, {pipeline_mode = #tpu.pipeline_mode<synchronous>, transform_indices = @transform_2, window_bounds = array<i64: 1, 256>}, {pipeline_mode = #tpu.pipeline_mode<synchronous>, transform_indices = @transform_3, window_bounds = array<i64: 256, 128>}, {pipeline_mode = #tpu.pipeline_mode<synchronous>, transform_indices = @transform_4, window_bounds = array<i64: 1, 128>}, {pipeline_mode = #tpu.pipeline_mode<synchronous>, transform_indices = @transform_5, window_bounds = array<i64: 128, 128>}, {pipeline_mode = #tpu.pipeline_mode<synchronous>, transform_indices = @transform_6, window_bounds = array<i64: 1, 128>}, {pipeline_mode = #tpu.pipeline_mode<synchronous>, transform_indices = @transform_7, window_bounds = array<i64: 128, 128>}, {pipeline_mode = #tpu.pipeline_mode<synchronous>, transform_indices = @transform_8, window_bounds = array<i64: 1, 128>}, {transform_indices = @transform_9, window_bounds = array<i64: 8, 128>}]} {
    %c0 = arith.constant 0 : index
    %c0_0 = arith.constant 0 : index
    %0 = vector.load %arg1[%c0, %c0_0] : memref<8x1024xf32, #tpu.memory_space<vmem>>, vector<8x1024xf32>
    %1 = arith.truncf %0 : vector<8x1024xf32> to vector<8x1024xbf16>
    %c0_1 = arith.constant 0 : index
    %c0_2 = arith.constant 0 : index
    %2 = vector.load %arg2[%c0_1, %c0_2] : memref<1024x256xbf16, #tpu.memory_space<vmem>>, vector<1024x256xbf16>
    %cst = arith.constant dense<0.000000e+00> : vector<8x256xf32>
    %3 = tpu.matmul %1, %2, %cst {dimension_numbers = #tpu.dot_dimension_numbers<[1], [0], [0], [1], [0, 0, 1, 1], [], []>} : vector<8x1024xbf16>, vector<1024x256xbf16>, vector<8x256xf32> -> vector<8x256xf32>
    %c0_3 = arith.constant 0 : index
    %c0_4 = arith.constant 0 : index
    %4 = vector.load %arg3[%c0_3, %c0_4] : memref<1x256xf32, #tpu.memory_space<vmem>>, vector<1x256xf32>
    %5 = vector.broadcast %4 : vector<1x256xf32> to vector<8x256xf32>
    %6 = arith.addf %3, %5 : vector<8x256xf32>
    %7 = arith.negf %6 : vector<8x256xf32>
    %8 = math.exp %7 : vector<8x256xf32>
    %cst_5 = arith.constant 1.000000e+00 : f32
    %9 = vector.broadcast %cst_5 : f32 to vector<8x256xf32>
    %10 = arith.addf %9, %8 : vector<8x256xf32>
    %11 = arith.divf %9, %10 : vector<8x256xf32>
    %12 = arith.truncf %11 : vector<8x256xf32> to vector<8x256xbf16>
    %c0_6 = arith.constant 0 : index
    %c0_7 = arith.constant 0 : index
    %13 = vector.load %arg4[%c0_6, %c0_7] : memref<256x128xbf16, #tpu.memory_space<vmem>>, vector<256x128xbf16>
    %cst_8 = arith.constant dense<0.000000e+00> : vector<8x128xf32>
    %14 = tpu.matmul %12, %13, %cst_8 {dimension_numbers = #tpu.dot_dimension_numbers<[1], [0], [0], [1], [0, 0, 1, 1], [], []>} : vector<8x256xbf16>, vector<256x128xbf16>, vector<8x128xf32> -> vector<8x128xf32>
    %c0_9 = arith.constant 0 : index
    %c0_10 = arith.constant 0 : index
    %15 = vector.load %arg5[%c0_9, %c0_10] : memref<1x128xf32, #tpu.memory_space<vmem>>, vector<1x128xf32>
    %16 = vector.broadcast %15 : vector<1x128xf32> to vector<8x128xf32>
    %17 = arith.addf %14, %16 : vector<8x128xf32>
    %18 = arith.negf %17 : vector<8x128xf32>
    %19 = math.exp %18 : vector<8x128xf32>
    %cst_11 = arith.constant 1.000000e+00 : f32
    %20 = vector.broadcast %cst_11 : f32 to vector<8x128xf32>
    %21 = arith.addf %20, %19 : vector<8x128xf32>
    %22 = arith.divf %20, %21 : vector<8x128xf32>
    %23 = arith.truncf %22 : vector<8x128xf32> to vector<8x128xbf16>
    %c0_12 = arith.constant 0 : index
    %c0_13 = arith.constant 0 : index
    %24 = vector.load %arg6[%c0_12, %c0_13] : memref<128x128xbf16, #tpu.memory_space<vmem>>, vector<128x128xbf16>
    %cst_14 = arith.constant dense<0.000000e+00> : vector<8x128xf32>
    %25 = tpu.matmul %23, %24, %cst_14 {dimension_numbers = #tpu.dot_dimension_numbers<[1], [0], [0], [1], [0, 0, 1, 1], [], []>} : vector<8x128xbf16>, vector<128x128xbf16>, vector<8x128xf32> -> vector<8x128xf32>
    %c0_15 = arith.constant 0 : index
    %c0_16 = arith.constant 0 : index
    %26 = vector.load %arg7[%c0_15, %c0_16] : memref<1x128xf32, #tpu.memory_space<vmem>>, vector<1x128xf32>
    %27 = vector.broadcast %26 : vector<1x128xf32> to vector<8x128xf32>
    %28 = arith.addf %25, %27 : vector<8x128xf32>
    %cst_17 = arith.constant 0.000000e+00 : f32
    %29 = vector.broadcast %cst_17 : f32 to vector<8x128xf32>
    %30 = arith.maximumf %28, %29 : vector<8x128xf32>
    %31 = arith.truncf %30 : vector<8x128xf32> to vector<8x128xbf16>
    %c0_18 = arith.constant 0 : index
    %c0_19 = arith.constant 0 : index
    %32 = vector.load %arg8[%c0_18, %c0_19] : memref<128x128xbf16, #tpu.memory_space<vmem>>, vector<128x128xbf16>
    %cst_20 = arith.constant dense<0.000000e+00> : vector<8x128xf32>
    %33 = tpu.matmul %31, %32, %cst_20 {dimension_numbers = #tpu.dot_dimension_numbers<[1], [0], [0], [1], [0, 0, 1, 1], [], []>} : vector<8x128xbf16>, vector<128x128xbf16>, vector<8x128xf32> -> vector<8x128xf32>
    %c0_21 = arith.constant 0 : index
    %c0_22 = arith.constant 0 : index
    %34 = vector.load %arg9[%c0_21, %c0_22] : memref<1x128xf32, #tpu.memory_space<vmem>>, vector<1x128xf32>
    %35 = vector.broadcast %34 : vector<1x128xf32> to vector<8x128xf32>
    %36 = arith.addf %33, %35 : vector<8x128xf32>
    %c0_23 = arith.constant 0 : index
    %c0_24 = arith.constant 0 : index
    %37 = vector.load %arg10[%c0_23, %c0_24] : memref<8x128xf32, #tpu.memory_space<vmem>>, vector<8x128xf32>
    tpu.vector_store %arg10[%c0_23, %c0_24], %36 {strides = array<i32>} : memref<8x128xf32, #tpu.memory_space<vmem>>, vector<8x128xf32>,
    return
  }
  func.func @transform_0(%arg0: i32) -> (i32, i32) {
    %c0_i32 = arith.constant 0 : i32
    %c0_i32_0 = arith.constant 0 : i32
    return %arg0, %c0_i32 : i32, i32
  }
  func.func @transform_1(%arg0: i32) -> (i32, i32) {
    %c0_i32 = arith.constant 0 : i32
    %c0_i32_0 = arith.constant 0 : i32
    %c0_i32_1 = arith.constant 0 : i32
    return %c0_i32, %c0_i32_0 : i32, i32
  }
  func.func @transform_2(%arg0: i32) -> (i32, i32) {
    %c0_i32 = arith.constant 0 : i32
    %c0_i32_0 = arith.constant 0 : i32
    %c0_i32_1 = arith.constant 0 : i32
    return %c0_i32, %c0_i32_0 : i32, i32
  }
  func.func @transform_3(%arg0: i32) -> (i32, i32) {
    %c0_i32 = arith.constant 0 : i32
    %c0_i32_0 = arith.constant 0 : i32
    %c0_i32_1 = arith.constant 0 : i32
    return %c0_i32, %c0_i32_0 : i32, i32
  }
  func.func @transform_4(%arg0: i32) -> (i32, i32) {
    %c0_i32 = arith.constant 0 : i32
    %c0_i32_0 = arith.constant 0 : i32
    %c0_i32_1 = arith.constant 0 : i32
    return %c0_i32, %c0_i32_0 : i32, i32
  }
  func.func @transform_5(%arg0: i32) -> (i32, i32) {
    %c0_i32 = arith.constant 0 : i32
    %c0_i32_0 = arith.constant 0 : i32
    %c0_i32_1 = arith.constant 0 : i32
    return %c0_i32, %c0_i32_0 : i32, i32
  }
  func.func @transform_6(%arg0: i32) -> (i32, i32) {
    %c0_i32 = arith.constant 0 : i32
    %c0_i32_0 = arith.constant 0 : i32
    %c0_i32_1 = arith.constant 0 : i32
    return %c0_i32, %c0_i32_0 : i32, i32
  }
  func.func @transform_7(%arg0: i32) -> (i32, i32) {
    %c0_i32 = arith.constant 0 : i32
    %c0_i32_0 = arith.constant 0 : i32
    %c0_i32_1 = arith.constant 0 : i32
    return %c0_i32, %c0_i32_0 : i32, i32
  }
  func.func @transform_8(%arg0: i32) -> (i32, i32) {
    %c0_i32 = arith.constant 0 : i32
    %c0_i32_0 = arith.constant 0 : i32
    %c0_i32_1 = arith.constant 0 : i32
    return %c0_i32, %c0_i32_0 : i32, i32
  }
  func.func @transform_9(%arg0: i32) -> (i32, i32) {
    %c0_i32 = arith.constant 0 : i32
    %c0_i32_0 = arith.constant 0 : i32
    return %arg0, %c0_i32 : i32, i32
  }
}

</mosaic_0001>

<bundles_post_ra>
// kernel: tpu_custom_call.1
= control target key start
LH: loop header
LB: loop body
LE: loop exit
PB: predicated region body
PF: predicated region fallthrough
CT: control target
= control target key end

     0   :  { %14 = vsyncpa [#allocation3], 0  ;;  %s2221_s0 = inlined_call_operand.hbm [shape: f32[8,1024], index: 0, kind: input, shape index: {}]   ;;  %s2222_s1 = inlined_call_operand.hbm [shape: bf16[1024,256], index: 1, kind: input, shape index: {}]   ;;  %s2223_s2 = inlined_call_operand.vmem [shape: f32[1,256], index: 2, kind: input, shape index: {}]   ;;  %s2224_s3 = inlined_call_operand.hbm [shape: bf16[256,128], index: 3, kind: input, shape index: {}]   ;;  %s2225_s4 = inlined_call_operand.vmem [shape: f32[1,128], index: 4, kind: input, shape index: {}]   ;;  %s2226_s5 = inlined_call_operand.hbm [shape: bf16[128,128], index: 5, kind: input, shape index: {}]   ;;  %s2227_s6 = inlined_call_operand.vmem [shape: f32[1,128], index: 6, kind: input, shape index: {}]   ;;  %s2228_s7 = inlined_call_operand.hbm [shape: bf16[128,128], index: 7, kind: input, shape index: {}]   ;;  %s2229_s8 = inlined_call_operand.vmem [shape: f32[1,128], index: 8, kind: input, shape index: {}]   ;;  %s2230_s9 = inlined_call_operand.hbm [shape: f32[8,128], index: 9, kind: output, shape index: {}]  }
   0x1   :  { %15 = vsyncpa [#allocation6], 0 }
   0x2   :  { %16 = vsyncpa [#allocation9], 0 }
   0x3   :  { %17 = vsyncpa [#allocation4], 0  ;;  %s2120_s30 = smov [#allocation5]  }
   0x4   :  { %s33_s10 = sshll.u32 %s2120_s30, 4  ;;  %s34_s10 = int_to_ptr.vmem [resolvable:$true] %s33_s10 }
   0x5   :  { %s2000_s11 = scalar_lea.vmem %s34_s10, 16384  ;;  %p2005_p1 = scmp.lt.s32.totalorder %s34_s10, %s34_s10 }
   0x6   :  { %p2001_p0 = scmp.ne.s32.totalorder %s34_s10, %s2000_s11  ;;  %p2006_p2 = scmp.lt.s32.totalorder %s2000_s11, %s2000_s11 }
   0x8   :  { %p2007_p3 = por %p2006_p2, %p2005_p1 }
   0xa   :  { %p2008_p4 = pnand %p2007_p3, %p2001_p0 }
   0xc   :  { %2011 = shalt.err (!%p2008_p4)
}
   0xd   :  { %s2121_s12 = smov 128   ;;  %s2122_s13 = smov 8  }
   0xe   :  { %39 = dma.hbm_to_vmem [thread:$0]  %s2222_s1, 16384, %s34_s10, [#allocation6], %s2121_s12, %s2121_s12, %s2122_s13  }
   0xf   :  { %s2123_s16 = smov [#allocation8]   ;;  %s2124_s18 = smov [#allocation2]  }
  0x10   :  { %s61_s17 = sshll.u32 %s2123_s16, 4  ;;  %s24_s19 = sshll.u32 %s2124_s18, 4  ;;  %s62_s17 = int_to_ptr.vmem [resolvable:$true] %s61_s17  ;;  %s25_s19 = int_to_ptr.vmem [resolvable:$true] %s24_s19 }
  0x11   :  { %s2020_s20 = scalar_lea.vmem %s62_s17, 1024  ;;  %p2025_p6 = scmp.lt.s32.totalorder %s62_s17, %s62_s17 }
  0x12   :  { %p2021_p5 = scmp.ne.s32.totalorder %s62_s17, %s2020_s20  ;;  %p2026_p7 = scmp.lt.s32.totalorder %s2020_s20, %s2020_s20 }
  0x14   :  { %p2027_p8 = por %p2026_p7, %p2025_p6 }
  0x16   :  { %p2028_p9 = pnand %p2027_p8, %p2021_p5 }
  0x18   :  { %2031 = shalt.err (!%p2028_p9)
}
  0x19   :  { %s2125_s21 = smov 64   ;;  %s2126_s22 = smov 4  }
  0x1a   :  { %67 = dma.hbm_to_vmem [thread:$0]  %s2226_s5, 1024, %s62_s17, [#allocation9], %s2125_s21, %s2125_s21, %s2126_s22  }
  0x1b   :  { %s2040_s1 = scalar_lea.vmem %s25_s19, 1024  ;;  %p2045_p11 = scmp.lt.s32.totalorder %s25_s19, %s25_s19 }
  0x1c   :  { %p2041_p10 = scmp.ne.s32.totalorder %s25_s19, %s2040_s1  ;;  %p2046_p12 = scmp.lt.s32.totalorder %s2040_s1, %s2040_s1 }
  0x1e   :  { %p2047_p13 = por %p2046_p12, %p2045_p11 }
  0x20   :  { %p2048_p0 = pnand %p2047_p13, %p2041_p10 }
  0x22   :  { %2051 = shalt.err (!%p2048_p0)
}
  0x23   :  { %27 = dma.hbm_to_vmem [thread:$0]  %s2221_s0, 1024, %s25_s19, [#allocation3]  }
  0x24   :  { %s2127_s27 = smov [#allocation7]   ;;  %s2128_s29 = smov [#allocation10]  }
  0x25   :  { %s47_s28 = sshll.u32 %s2127_s27, 4  ;;  %s75_s30 = sshll.u32 %s2128_s29, 4  ;;  %s48_s28 = int_to_ptr.vmem [resolvable:$true] %s47_s28  ;;  %s76_s30 = int_to_ptr.vmem [resolvable:$true] %s75_s30 }
  0x26   :  { %s2060_s10 = scalar_lea.vmem %s48_s28, 2048  ;;  %p2065_p2 = scmp.lt.s32.totalorder %s48_s28, %s48_s28 }
  0x27   :  { %p2061_p1 = scmp.ne.s32.totalorder %s48_s28, %s2060_s10  ;;  %p2066_p3 = scmp.lt.s32.totalorder %s2060_s10, %s2060_s10 }
  0x29   :  { %p2067_p4 = por %p2066_p3, %p2065_p2 }
  0x2b   :  { %p2068_p5 = pnand %p2067_p4, %p2061_p1 }
  0x2d   :  { %2071 = shalt.err (!%p2068_p5)
}
  0x2e   :  { %53 = dma.hbm_to_vmem [thread:$0]  %s2224_s3, 2048, %s48_s28, [#allocation6], %s2125_s21, %s2125_s21, %s2126_s22  }
  0x2f   :  { %s2080_s0 = scalar_lea.vmem %s76_s30, 1024  ;;  %p2085_p7 = scmp.lt.s32.totalorder %s76_s30, %s76_s30 }
  0x30   :  { %p2081_p6 = scmp.ne.s32.totalorder %s76_s30, %s2080_s0  ;;  %p2086_p8 = scmp.lt.s32.totalorder %s2080_s0, %s2080_s0 }
  0x32   :  { %p2087_p9 = por %p2086_p8, %p2085_p7 }
  0x34   :  { %p2088_p10 = pnand %p2087_p9, %p2081_p6 }
  0x36   :  { %2091 = shalt.err (!%p2088_p10)
}
  0x37   :  { %81 = dma.hbm_to_vmem [thread:$0]  %s2228_s7, 1024, %s76_s30, [#allocation9], %s2125_s21, %s2125_s21, %s2126_s22  }
  0x38   :  { %2112 = dma.done.wait [#allocation3], 1024  }
  0x39   :  { %2113 = vsyncadd [#allocation3], 4294966272 }
  0x3a   :  { %2114 = dma.done.wait [#allocation6], 18432  }
  0x3b   :  { %2115 = vsyncadd [#allocation6], 4294948864 }
  0x3c   :  { %2116 = dma.done.wait [#allocation9], 2048  }
  0x3d   :  { %2117 = vsyncadd [#allocation9], 4294965248  ;;  %v1756_v0 = vld [vmem:[#allocation5 + $0x74] ss:$8 sps:$4 sm:$0xff]   ;;  %v1760_v2 = vld [vmem:[#allocation5 + $0x70] ss:$8 sps:$4 sm:$0xff]  }
  0x3e   :  { %v1758_v1 = vld [vmem:[#allocation5 + $0x174] ss:$8 sps:$4 sm:$0xff]   ;;  %896 = vmatprep.subr.bf16.mxu0 %v1756_v0  ;;  %v1761_v3 = vld [vmem:[#allocation5 + $0x170] ss:$8 sps:$4 sm:$0xff]   ;;  %v1762_v4 = vld [vmem:[#allocation5 + $0x64] ss:$8 sps:$4 sm:$0xff]  }
  0x3f   :  { %937 = vmatprep.subr.bf16.mxu1 %v1758_v1  ;;  %897 = vmatpush1.bf16.msra.mxu0 %v1760_v2  ;;  %v1764_v5 = vld [vmem:[#allocation5 + $0x164] ss:$8 sps:$4 sm:$0xff]   ;;  %v1766_v6 = vld [vmem:[#allocation5 + $0x60] ss:$8 sps:$4 sm:$0xff]   ;;  %v1768_v8 = vld [vmem:[#allocation5 + $0x54] ss:$8 sps:$4 sm:$0xff]  }
  0x40   :  { %938 = vmatpush1.bf16.msra.mxu1 %v1761_v3  ;;  %898 = vmatprep.subr.bf16.mxu0 %v1762_v4  ;;  %v1767_v7 = vld [vmem:[#allocation5 + $0x160] ss:$8 sps:$4 sm:$0xff]   ;;  %v1770_v9 = vld [vmem:[#allocation5 + $0x154] ss:$8 sps:$4 sm:$0xff]   ;;  %v1772_v10 = vld [vmem:[#allocation5 + $0x50] ss:$8 sps:$4 sm:$0xff]  }
  0x41   :  { %939 = vmatprep.subr.bf16.mxu1 %v1764_v5  ;;  %v1773_v11 = vld [vmem:[#allocation5 + $0x150] ss:$8 sps:$4 sm:$0xff]   ;;  %v1774_v12 = vld [vmem:[#allocation5 + $0x44] ss:$8 sps:$4 sm:$0xff]   ;;  %v1778_v14 = vld [vmem:[#allocation5 + $0x40] ss:$8 sps:$4 sm:$0xff]  }
  0x42   :  { %v1776_v13 = vld [vmem:[#allocation5 + $0x144] ss:$8 sps:$4 sm:$0xff]   ;;  %v1779_v15 = vld [vmem:[#allocation5 + $0x140] ss:$8 sps:$4 sm:$0xff]   ;;  %v1780_v16 = vld [vmem:[#allocation5 + $0x34] ss:$8 sps:$4 sm:$0xff]  }
  0x43   :  { %899 = vmatpush1.bf16.msra.mxu0 %v1766_v6  ;;  %v1782_v17 = vld [vmem:[#allocation5 + $0x134] ss:$8 sps:$4 sm:$0xff]   ;;  %v1784_v18 = vld [vmem:[#allocation5 + $0x30] ss:$8 sps:$4 sm:$0xff]   ;;  %v1786_v20 = vld [vmem:[#allocation5 + $0x24] ss:$8 sps:$4 sm:$0xff]  }
  0x44   :  { %940 = vmatpush1.bf16.msra.mxu1 %v1767_v7  ;;  %900 = vmatprep.subr.bf16.mxu0 %v1768_v8  ;;  %v1785_v19 = vld [vmem:[#allocation5 + $0x130] ss:$8 sps:$4 sm:$0xff]   ;;  %v1788_v21 = vld [vmem:[#allocation5 + $0x124] ss:$8 sps:$4 sm:$0xff]   ;;  %v1790_v22 = vld [vmem:[#allocation5 + $0x20] ss:$8 sps:$4 sm:$0xff]  }
  0x45   :  { %941 = vmatprep.subr.bf16.mxu1 %v1770_v9  ;;  %v1791_v23 = vld [vmem:[#allocation5 + $0x120] ss:$8 sps:$4 sm:$0xff]   ;;  %v1792_v24 = vld [vmem:[#allocation5 + $0x14] ss:$8 sps:$4 sm:$0xff]   ;;  %v1796_v26 = vld [vmem:[#allocation5 + $0x10] ss:$8 sps:$4 sm:$0xff]  }
  0x46   :  { %v1794_v25 = vld [vmem:[#allocation5 + $0x114] ss:$8 sps:$4 sm:$0xff]   ;;  %v1797_v27 = vld [vmem:[#allocation5 + $0x110] ss:$8 sps:$4 sm:$0xff]   ;;  %v1798_v28 = vld [vmem:[#allocation5 + $0x4] ss:$8 sps:$4 sm:$0xff]  }
  0x47   :  { %901 = vmatpush1.bf16.msra.mxu0 %v1772_v10  ;;  %v1800_v29 = vld [vmem:[#allocation5 + $0x104] ss:$8 sps:$4 sm:$0xff]   ;;  %v1802_v30 = vld [vmem:[#allocation5] ss:$8 sps:$4 sm:$0xff]   ;;  %v1804_v32 = vld [vmem:[#allocation5 + $0xf4] ss:$8 sps:$4 sm:$0xff]  }
  0x48   :  { %942 = vmatpush1.bf16.msra.mxu1 %v1773_v11  ;;  %902 = vmatprep.subr.bf16.mxu0 %v1774_v12  ;;  %v1803_v31 = vld [vmem:[#allocation5 + $0x100] ss:$8 sps:$4 sm:$0xff]   ;;  %v1806_v33 = vld [vmem:[#allocation5 + $0x1f4] ss:$8 sps:$4 sm:$0xff]   ;;  %v1808_v34 = vld [vmem:[#allocation5 + $0xf0] ss:$8 sps:$4 sm:$0xff]  }
  0x49   :  { %943 = vmatprep.subr.bf16.mxu1 %v1776_v13  ;;  %v1809_v35 = vld [vmem:[#allocation5 + $0x1f0] ss:$8 sps:$4 sm:$0xff]   ;;  %v1810_v36 = vld [vmem:[#allocation5 + $0xe4] ss:$8 sps:$4 sm:$0xff]   ;;  %v1814_v38 = vld [vmem:[#allocation5 + $0xe0] ss:$8 sps:$4 sm:$0xff]  }
  0x4a   :  { %v1812_v37 = vld [vmem:[#allocation5 + $0x1e4] ss:$8 sps:$4 sm:$0xff]   ;;  %v1815_v39 = vld [vmem:[#allocation5 + $0x1e0] ss:$8 sps:$4 sm:$0xff]   ;;  %v1816_v40 = vld [vmem:[#allocation5 + $0xd4] ss:$8 sps:$4 sm:$0xff]  }
  0x4b   :  { %903 = vmatpush1.bf16.msra.mxu0 %v1778_v14  ;;  %v1818_v41 = vld [vmem:[#allocation5 + $0x1d4] ss:$8 sps:$4 sm:$0xff]   ;;  %v1820_v42 = vld [vmem:[#allocation5 + $0xd0] ss:$8 sps:$4 sm:$0xff]   ;;  %v1822_v44 = vld [vmem:[#allocation5 + $0xc4] ss:$8 sps:$4 sm:$0xff]  }
  0x4c   :  { %944 = vmatpush1.bf16.msra.mxu1 %v1779_v15  ;;  %904 = vmatprep.subr.bf16.mxu0 %v1780_v16  ;;  %v1821_v43 = vld [vmem:[#allocation5 + $0x1d0] ss:$8 sps:$4 sm:$0xff]   ;;  %v1824_v45 = vld [vmem:[#allocation5 + $0x1c4] ss:$8 sps:$4 sm:$0xff]   ;;  %v1826_v47 = vld [vmem:[#allocation5 + $0xc0] ss:$8 sps:$4 sm:$0xff]  }
  0x4d   :  { %945 = vmatprep.subr.bf16.mxu1 %v1782_v17  ;;  %v101_v46 = vld [vmem:[#allocation2 + $0x8] sm:$0xff]  ;;  %v103_v50 = vld [vmem:[#allocation2 + $0x18] sm:$0xff]  ;;  %v100_v4 = vld [vmem:[#allocation2] sm:$0xff]  ;;  %vm2130_vm0 = vmmov 0   ;;  %s2131_s18 = smov [#allocation11]  }
  0x4e   :  { %v1827_v48 = vld [vmem:[#allocation5 + $0x1c0] ss:$8 sps:$4 sm:$0xff]   ;;  %v109_v49 = vpack.c.bf16 %v101_v46, %v101_v46  ;;  %v1828_v51 = vld [vmem:[#allocation5 + $0xb4] ss:$8 sps:$4 sm:$0xff]   ;;  %v111_v52 = vpack.c.bf16 %v103_v50, %v103_v50  ;;  %v1832_v54 = vld [vmem:[#allocation5 + $0xb0] ss:$8 sps:$4 sm:$0xff]   ;;  %v108_v8 = vpack.c.bf16 %v100_v4, %v100_v4 }
  0x4f   :  { %905 = vmatpush1.bf16.msra.mxu0 %v1784_v18  ;;  %v1830_v53 = vld [vmem:[#allocation5 + $0x1b4] ss:$8 sps:$4 sm:$0xff]   ;;  %v1833_v55 = vld [vmem:[#allocation5 + $0x1b0] ss:$8 sps:$4 sm:$0xff]   ;;  %v1834_v56 = vld [vmem:[#allocation5 + $0xa4] ss:$8 sps:$4 sm:$0xff]  }
  0x50   :  { %946 = vmatpush1.bf16.msra.mxu1 %v1785_v19  ;;  %906 = vmatprep.subr.bf16.mxu0 %v1786_v20  ;;  %v1836_v57 = vld [vmem:[#allocation5 + $0x1a4] ss:$8 sps:$4 sm:$0xff]   ;;  %v1838_v58 = vld [vmem:[#allocation5 + $0xa0] ss:$8 sps:$4 sm:$0xff]   ;;  %v1840_v60 = vld [vmem:[#allocation5 + $0x94] ss:$8 sps:$4 sm:$0xff]  }
  0x51   :  { %947 = vmatprep.subr.bf16.mxu1 %v1788_v21  ;;  %928 = vmatprep.mubr.bf16.mxu0 %v109_v49  ;;  %v1839_v59 = vld [vmem:[#allocation5 + $0x1a0] ss:$8 sps:$4 sm:$0xff]   ;;  %v1842_v61 = vld [vmem:[#allocation5 + $0x194] ss:$8 sps:$4 sm:$0xff]   ;;  %v1844_v62 = vld [vmem:[#allocation5 + $0x90] ss:$8 sps:$4 sm:$0xff]  }
  0x52   :  { %969 = vmatprep.mubr.bf16.mxu1 %v111_v52  ;;  %v1845_v63 = vld [vmem:[#allocation5 + $0x190] ss:$8 sps:$4 sm:$0xff]   ;;  %v1846_v0 = vld [vmem:[#allocation5 + $0x84] ss:$8 sps:$4 sm:$0xff]   ;;  %v1850_v2 = vld [vmem:[#allocation5 + $0x80] ss:$8 sps:$4 sm:$0xff]  }
  0x53   :  { %907 = vmatpush1.bf16.msra.mxu0 %v1790_v22  ;;  %v1848_v1 = vld [vmem:[#allocation5 + $0x184] ss:$8 sps:$4 sm:$0xff]   ;;  %v1851_v3 = vld [vmem:[#allocation5 + $0x180] ss:$8 sps:$4 sm:$0xff]   ;;  %v102_v5 = vld [vmem:[#allocation2 + $0x10] sm:$0xff]  ;;  %s1487_s19 = sshll.u32 %s2131_s18, 4  ;;  %s1488_s19 = int_to_ptr.vmem [resolvable:$true] %s1487_s19 }
  0x54   :  { %948 = vmatpush1.bf16.msra.mxu1 %v1791_v23  ;;  %908 = vmatprep.subr.bf16.mxu0 %v1792_v24  ;;  %v1854_v6 = vld [vmem:[#allocation5 + $0x274] ss:$8 sps:$4 sm:$0xff]   ;;  %v110_v9 = vpack.c.bf16 %v102_v5, %v102_v5  ;;  %v1852_v10 = vld [vmem:[#allocation5 + $0x270] ss:$8 sps:$4 sm:$0xff]   ;;  %v1860_v12 = vld [vmem:[#allocation5 + $0x264] ss:$8 sps:$4 sm:$0xff]   ;;  %p2097_p12 = scmp.lt.s32.totalorder %s1488_s19, %s1488_s19 }
  0x55   :  { %949 = vmatprep.subr.bf16.mxu1 %v1794_v25  ;;  %v1857_v7 = vld [vmem:[#allocation5 + $0x374] ss:$8 sps:$4 sm:$0xff]   ;;  %v1855_v11 = vld [vmem:[#allocation5 + $0x370] ss:$8 sps:$4 sm:$0xff]   ;;  %v1863_v13 = vld [vmem:[#allocation5 + $0x364] ss:$8 sps:$4 sm:$0xff]  }
  0x56   :  { %v1858_v14 = vld [vmem:[#allocation5 + $0x260] ss:$8 sps:$4 sm:$0xff]   ;;  %v1866_v16 = vld [vmem:[#allocation5 + $0x254] ss:$8 sps:$4 sm:$0xff]   ;;  %v1864_v18 = vld [vmem:[#allocation5 + $0x250] ss:$8 sps:$4 sm:$0xff]  }
  0x57   :  { %909 = vmatpush1.bf16.msra.mxu0 %v1796_v26  ;;  %v1861_v15 = vld [vmem:[#allocation5 + $0x360] ss:$8 sps:$4 sm:$0xff]   ;;  %v1869_v17 = vld [vmem:[#allocation5 + $0x354] ss:$8 sps:$4 sm:$0xff]   ;;  %v1867_v19 = vld [vmem:[#allocation5 + $0x350] ss:$8 sps:$4 sm:$0xff]  }
  0x58   :  { %950 = vmatpush1.bf16.msra.mxu1 %v1797_v27  ;;  %910 = vmatprep.subr.bf16.mxu0 %v1798_v28  ;;  %v1872_v20 = vld [vmem:[#allocation5 + $0x244] ss:$8 sps:$4 sm:$0xff]   ;;  %v1870_v22 = vld [vmem:[#allocation5 + $0x240] ss:$8 sps:$4 sm:$0xff]   ;;  %v1878_v24 = vld [vmem:[#allocation5 + $0x234] ss:$8 sps:$4 sm:$0xff]  }
  0x59   :  { %951 = vmatprep.subr.bf16.mxu1 %v1800_v29  ;;  %v1875_v21 = vld [vmem:[#allocation5 + $0x344] ss:$8 sps:$4 sm:$0xff]   ;;  %v1873_v23 = vld [vmem:[#allocation5 + $0x340] ss:$8 sps:$4 sm:$0xff]   ;;  %v1881_v25 = vld [vmem:[#allocation5 + $0x334] ss:$8 sps:$4 sm:$0xff]  }
  0x5a   :  { %v1876_v26 = vld [vmem:[#allocation5 + $0x230] ss:$8 sps:$4 sm:$0xff]   ;;  %v1884_v28 = vld [vmem:[#allocation5 + $0x224] ss:$8 sps:$4 sm:$0xff]   ;;  %v1906_v50 = vld [vmem:[#allocation5 + $0x2e0] ss:$8 sps:$4 sm:$0xff]  }
  0x5b   :  { %911 = vmatpush1.bf16.msra.mxu0 %v1802_v30  ;;  %v1879_v27 = vld [vmem:[#allocation5 + $0x330] ss:$8 sps:$4 sm:$0xff]   ;;  %v1887_v29 = vld [vmem:[#allocation5 + $0x324] ss:$8 sps:$4 sm:$0xff]   ;;  %v1882_v30 = vld [vmem:[#allocation5 + $0x220] ss:$8 sps:$4 sm:$0xff]  }
  0x5c   :  { %952 = vmatpush1.bf16.msra.mxu1 %v1803_v31  ;;  %912 = vmatprep.subr.bf16.mxu0 %v1804_v32  ;;  %v1885_v31 = vld [vmem:[#allocation5 + $0x320] ss:$8 sps:$4 sm:$0xff]   ;;  %v1890_v32 = vld [vmem:[#allocation5 + $0x214] ss:$8 sps:$4 sm:$0xff]   ;;  %v1900_v46 = vld [vmem:[#allocation5 + $0x2f0] ss:$8 sps:$4 sm:$0xff]  }
  0x5d   :  { %953 = vmatprep.subr.bf16.mxu1 %v1806_v33  ;;  %v1893_v33 = vld [vmem:[#allocation5 + $0x314] ss:$8 sps:$4 sm:$0xff]   ;;  %v1911_v49 = vld [vmem:[#allocation5 + $0x3e4] ss:$8 sps:$4 sm:$0xff]  }
  0x5e   :  { %v1914_v52 = vld [vmem:[#allocation5 + $0x2d4] ss:$8 sps:$4 sm:$0xff]  }
  0x5f   :  { %913 = vmatpush2.bf16.msra.mxu0 %v1808_v34  ;;  %v1888_v34 = vld [vmem:[#allocation5 + $0x210] ss:$8 sps:$4 sm:$0xff]   ;;  %v1938_v4 = vld [vmem:[#allocation5 + $0x294] ss:$8 sps:$4 sm:$0xff]  }
  0x60   :  { %954 = vmatpush2.bf16.msra.mxu1 %v1809_v35  ;;  %914 = vmatprep.subr.bf16.mxu0 %v1810_v36  ;;  %v105_v35 = vld [vmem:[#allocation2 + $0x28] sm:$0xff]  ;;  %v1891_v36 = vld [vmem:[#allocation5 + $0x310] ss:$8 sps:$4 sm:$0xff]   ;;  %v1941_v5 = vld [vmem:[#allocation5 + $0x394] ss:$8 sps:$4 sm:$0xff]  }
  0x61   :  { %955 = vmatprep.subr.bf16.mxu1 %v1812_v37  ;;  %v1896_v37 = vld [vmem:[#allocation5 + $0x204] ss:$8 sps:$4 sm:$0xff]  }
  0x63   :  { %915 = vmatpush2.bf16.msra.mxu0 %v1814_v38  ;;  %v113_v38 = vpack.c.bf16 %v105_v35, %v105_v35 }
  0x64   :  { %956 = vmatpush2.bf16.msra.mxu1 %v1815_v39  ;;  %916 = vmatprep.subr.bf16.mxu0 %v1816_v40  ;;  %v107_v39 = vld [vmem:[#allocation2 + $0x38] sm:$0xff]  ;;  %v1899_v40 = vld [vmem:[#allocation5 + $0x304] ss:$8 sps:$4 sm:$0xff]  }
  0x65   :  { %957 = vmatprep.subr.bf16.mxu1 %v1818_v41  ;;  %v115_v41 = vpack.c.bf16 %v107_v39, %v107_v39 }
  0x67   :  { %917 = vmatpush2.bf16.msra.mxu0 %v1820_v42  ;;  %v1894_v42 = vld [vmem:[#allocation5 + $0x200] ss:$8 sps:$4 sm:$0xff]  }
  0x68   :  { %958 = vmatpush2.bf16.msra.mxu1 %v1821_v43  ;;  %918 = vmatprep.subr.bf16.mxu0 %v1822_v44  ;;  %v1897_v43 = vld [vmem:[#allocation5 + $0x300] ss:$8 sps:$4 sm:$0xff]   ;;  %v1902_v44 = vld [vmem:[#allocation5 + $0x2f4] ss:$8 sps:$4 sm:$0xff]  }
  0x69   :  { %959 = vmatprep.subr.bf16.mxu1 %v1824_v45  ;;  %v1905_v45 = vld [vmem:[#allocation5 + $0x3f4] ss:$8 sps:$4 sm:$0xff]  }
  0x6b   :  { %919 = vmatpush2.bf16.msra.mxu0 %v1826_v47  ;;  %v1903_v47 = vld [vmem:[#allocation5 + $0x3f0] ss:$8 sps:$4 sm:$0xff]  }
  0x6c   :  { %960 = vmatpush2.bf16.msra.mxu1 %v1827_v48  ;;  %920 = vmatprep.subr.bf16.mxu0 %v1828_v51  ;;  %v1908_v48 = vld [vmem:[#allocation5 + $0x2e4] ss:$8 sps:$4 sm:$0xff]   ;;  %v1909_v51 = vld [vmem:[#allocation5 + $0x3e0] ss:$8 sps:$4 sm:$0xff]  }
  0x6d   :  { %961 = vmatprep.subr.bf16.mxu1 %v1830_v53  ;;  %v1917_v53 = vld [vmem:[#allocation5 + $0x3d4] ss:$8 sps:$4 sm:$0xff]  }
  0x6f   :  { %921 = vmatpush2.bf16.msra.mxu0 %v1832_v54  ;;  %v1912_v54 = vld [vmem:[#allocation5 + $0x2d0] ss:$8 sps:$4 sm:$0xff]  }
  0x70   :  { %962 = vmatpush2.bf16.msra.mxu1 %v1833_v55  ;;  %922 = vmatprep.subr.bf16.mxu0 %v1834_v56  ;;  %v1915_v55 = vld [vmem:[#allocation5 + $0x3d0] ss:$8 sps:$4 sm:$0xff]   ;;  %v1920_v56 = vld [vmem:[#allocation5 + $0x2c4] ss:$8 sps:$4 sm:$0xff]  }
  0x71   :  { %963 = vmatprep.subr.bf16.mxu1 %v1836_v57  ;;  %v1923_v57 = vld [vmem:[#allocation5 + $0x3c4] ss:$8 sps:$4 sm:$0xff]  }
  0x73   :  { %923 = vmatpush2.bf16.msra.mxu0 %v1838_v58  ;;  %v1918_v58 = vld [vmem:[#allocation5 + $0x2c0] ss:$8 sps:$4 sm:$0xff]  }
  0x74   :  { %964 = vmatpush2.bf16.msra.mxu1 %v1839_v59  ;;  %924 = vmatprep.subr.bf16.mxu0 %v1840_v60  ;;  %v1921_v59 = vld [vmem:[#allocation5 + $0x3c0] ss:$8 sps:$4 sm:$0xff]   ;;  %v1926_v60 = vld [vmem:[#allocation5 + $0x2b4] ss:$8 sps:$4 sm:$0xff]  }
  0x75   :  { %965 = vmatprep.subr.bf16.mxu1 %v1842_v61  ;;  %v1929_v61 = vld [vmem:[#allocation5 + $0x3b4] ss:$8 sps:$4 sm:$0xff]  }
  0x77   :  { %925 = vmatpush2.bf16.msra.mxu0 %v1844_v62  ;;  %v1924_v62 = vld [vmem:[#allocation5 + $0x2b0] ss:$8 sps:$4 sm:$0xff]  }
  0x78   :  { %966 = vmatpush2.bf16.msra.mxu1 %v1845_v63  ;;  %926 = vmatprep.subr.bf16.mxu0 %v1846_v0  ;;  %v1927_v63 = vld [vmem:[#allocation5 + $0x3b0] ss:$8 sps:$4 sm:$0xff]   ;;  %v1932_v0 = vld [vmem:[#allocation5 + $0x2a4] ss:$8 sps:$4 sm:$0xff]  }
  0x79   :  { %967 = vmatprep.subr.bf16.mxu1 %v1848_v1  ;;  %v1935_v1 = vld [vmem:[#allocation5 + $0x3a4] ss:$8 sps:$4 sm:$0xff]  }
  0x7b   :  { %927 = vmatpush2.bf16.msra.mxu0 %v1850_v2  ;;  %v1930_v2 = vld [vmem:[#allocation5 + $0x2a0] ss:$8 sps:$4 sm:$0xff]  }
  0x7c   :  { %968 = vmatpush2.bf16.msra.mxu1 %v1851_v3  ;;  %978 = vmatprep.subr.bf16.mxu0 %v1854_v6  ;;  %v1933_v3 = vld [vmem:[#allocation5 + $0x3a0] ss:$8 sps:$4 sm:$0xff]   ;;  %v1936_v6 = vld [vmem:[#allocation5 + $0x290] ss:$8 sps:$4 sm:$0xff]  }
  0x7d   :  { %1019 = vmatprep.subr.bf16.mxu1 %v1857_v7  ;;  %v1939_v7 = vld [vmem:[#allocation5 + $0x390] ss:$8 sps:$4 sm:$0xff]  }
  0x7e   :  { %929 = vmatmul.mubr.bf16.vlgmr.msra.gmra.mxu0 %v108_v8  ;;  %v1944_v8 = vld [vmem:[#allocation5 + $0x284] ss:$8 sps:$4 sm:$0xff]  }
  0x7f   :  { %970 = vmatmul.mubr.bf16.vlgmr.msra.gmra.mxu1 %v110_v9  ;;  %979 = vmatpush1.bf16.msra.mxu0 %v1852_v10  ;;  %v1947_v9 = vld [vmem:[#allocation5 + $0x384] ss:$8 sps:$4 sm:$0xff]   ;;  %v1942_v10 = vld [vmem:[#allocation5 + $0x280] ss:$8 sps:$4 sm:$0xff]  }
  0x80   :  { %1020 = vmatpush1.bf16.msra.mxu1 %v1855_v11  ;;  %980 = vmatprep.subr.bf16.mxu0 %v1860_v12  ;;  %v1945_v11 = vld [vmem:[#allocation5 + $0x380] ss:$8 sps:$4 sm:$0xff]  }
  0x81   :  { %1021 = vmatprep.subr.bf16.mxu1 %v1863_v13  ;;  %1010 = vmatprep.mubr.bf16.mxu0 %v113_v38  ;;  %v104_v12 = vld [vmem:[#allocation2 + $0x20] sm:$0xff]  ;;  %v106_v13 = vld [vmem:[#allocation2 + $0x30] sm:$0xff] }
  0x82   :  { %1051 = vmatprep.mubr.bf16.mxu1 %v115_v41 }
  0x83   :  { %981 = vmatpush1.bf16.msra.mxu0 %v1858_v14  ;;  %v112_v14 = vpack.c.bf16 %v104_v12, %v104_v12  ;;  %v1966_v12 = vld [vmem:[#allocation8 + $0x28] sm:$0xff]  }
  0x84   :  { %1022 = vmatpush1.bf16.msra.mxu1 %v1861_v15  ;;  %982 = vmatprep.subr.bf16.mxu0 %v1866_v16  ;;  %v114_v15 = vpack.c.bf16 %v106_v13, %v106_v13  ;;  %v1948_v16 = vld [vmem:[#allocation7 + $0x78] sm:$0xff]   ;;  %v1967_v13 = vld [vmem:[#allocation8 + $0x20] sm:$0xff]  }
  0x85   :  { %1023 = vmatprep.subr.bf16.mxu1 %v1869_v17  ;;  %v1949_v17 = vld [vmem:[#allocation7 + $0x38] sm:$0xff]  }
  0x87   :  { %983 = vmatpush1.bf16.msra.mxu0 %v1864_v18  ;;  %v1950_v18 = vld [vmem:[#allocation7 + $0x70] sm:$0xff]  }
  0x88   :  { %1024 = vmatpush1.bf16.msra.mxu1 %v1867_v19  ;;  %984 = vmatprep.subr.bf16.mxu0 %v1872_v20  ;;  %v1951_v19 = vld [vmem:[#allocation7 + $0x30] sm:$0xff]   ;;  %v1952_v20 = vld [vmem:[#allocation7 + $0x68] sm:$0xff]  }
  0x89   :  { %1025 = vmatprep.subr.bf16.mxu1 %v1875_v21  ;;  %v1953_v21 = vld [vmem:[#allocation7 + $0x28] sm:$0xff]  }
  0x8b   :  { %985 = vmatpush1.bf16.msra.mxu0 %v1870_v22  ;;  %v1954_v22 = vld [vmem:[#allocation7 + $0x60] sm:$0xff]  }
  0x8c   :  { %1026 = vmatpush1.bf16.msra.mxu1 %v1873_v23  ;;  %986 = vmatprep.subr.bf16.mxu0 %v1878_v24  ;;  %v1955_v23 = vld [vmem:[#allocation7 + $0x20] sm:$0xff]   ;;  %v1956_v24 = vld [vmem:[#allocation7 + $0x58] sm:$0xff]  }
  0x8d   :  { %1027 = vmatprep.subr.bf16.mxu1 %v1881_v25  ;;  %v1957_v25 = vld [vmem:[#allocation7 + $0x18] sm:$0xff]  }
  0x8f   :  { %987 = vmatpush1.bf16.msra.mxu0 %v1876_v26  ;;  %v1958_v26 = vld [vmem:[#allocation7 + $0x50] sm:$0xff]  }
  0x90   :  { %1028 = vmatpush1.bf16.msra.mxu1 %v1879_v27  ;;  %988 = vmatprep.subr.bf16.mxu0 %v1884_v28  ;;  %v1959_v27 = vld [vmem:[#allocation7 + $0x10] sm:$0xff]   ;;  %v1960_v28 = vld [vmem:[#allocation7 + $0x48] sm:$0xff]  }
  0x91   :  { %1029 = vmatprep.subr.bf16.mxu1 %v1887_v29  ;;  %v1961_v29 = vld [vmem:[#allocation7 + $0x8] sm:$0xff]  }
  0x93   :  { %989 = vmatpush1.bf16.msra.mxu0 %v1882_v30  ;;  %v1962_v30 = vld [vmem:[#allocation7 + $0x40] sm:$0xff]  }
  0x94   :  { %1030 = vmatpush1.bf16.msra.mxu1 %v1885_v31  ;;  %990 = vmatprep.subr.bf16.mxu0 %v1890_v32  ;;  %v1963_v31 = vld [vmem:[#allocation7] sm:$0xff]  }
  0x95   :  { %1031 = vmatprep.subr.bf16.mxu1 %v1893_v33 }
  0x97   :  { %991 = vmatpush1.bf16.msra.mxu0 %v1888_v34 }
  0x98   :  { %1032 = vmatpush1.bf16.msra.mxu1 %v1891_v36  ;;  %992 = vmatprep.subr.bf16.mxu0 %v1896_v37 }
  0x99   :  { %1033 = vmatprep.subr.bf16.mxu1 %v1899_v40  ;;  %v246_v40 = vlaneseq }
  0x9b   :  { %993 = vmatpush1.bf16.msra.mxu0 %v1894_v42  ;;  %v247_v41 = vshrl.u32 %v246_v40, 7 }
  0x9c   :  { %1034 = vmatpush1.bf16.msra.mxu1 %v1897_v43  ;;  %994 = vmatprep.subr.bf16.mxu0 %v1902_v44  ;;  %v244_v43 = vld [vmem:[%s2223_s2] sm:$0x3] }
  0x9d   :  { %1035 = vmatprep.subr.bf16.mxu1 %v1905_v45  ;;  %v248_v42 = vsub.s32 0, %v247_v41  ;;  %v252_v44 = vsub.s32 1, %v247_v41 }
  0x9f   :  { %995 = vmatpush2.bf16.msra.mxu0 %v1900_v46  ;;  %v249_v45 = vrot.slane %v244_v43, %v248_v42  ;;  %v253_v46 = vrot.slane %v244_v43, %v252_v44 }
  0xa0   :  { %1036 = vmatpush2.bf16.msra.mxu1 %v1903_v47  ;;  %996 = vmatprep.subr.bf16.mxu0 %v1908_v48 }
  0xa1   :  { %1037 = vmatprep.subr.bf16.mxu1 %v1911_v49 }
  0xa3   :  { %997 = vmatpush2.bf16.msra.mxu0 %v1906_v50 }
  0xa4   :  { %1038 = vmatpush2.bf16.msra.mxu1 %v1909_v51  ;;  %998 = vmatprep.subr.bf16.mxu0 %v1914_v52 }
  0xa5   :  { %1039 = vmatprep.subr.bf16.mxu1 %v1917_v53 }
  0xa7   :  { %999 = vmatpush2.bf16.msra.mxu0 %v1912_v54 }
  0xa8   :  { %1040 = vmatpush2.bf16.msra.mxu1 %v1915_v55  ;;  %1000 = vmatprep.subr.bf16.mxu0 %v1920_v56 }
  0xa9   :  { %1041 = vmatprep.subr.bf16.mxu1 %v1923_v57 }
  0xab   :  { %1001 = vmatpush2.bf16.msra.mxu0 %v1918_v58 }
  0xac   :  { %1042 = vmatpush2.bf16.msra.mxu1 %v1921_v59  ;;  %1002 = vmatprep.subr.bf16.mxu0 %v1926_v60 }
  0xad   :  { %1043 = vmatprep.subr.bf16.mxu1 %v1929_v61 }
  0xaf   :  { %1003 = vmatpush2.bf16.msra.mxu0 %v1924_v62 }
  0xb0   :  { %1044 = vmatpush2.bf16.msra.mxu1 %v1927_v63  ;;  %1004 = vmatprep.subr.bf16.mxu0 %v1932_v0 }
  0xb1   :  { %1045 = vmatprep.subr.bf16.mxu1 %v1935_v1 }
  0xb3   :  { %1005 = vmatpush2.bf16.msra.mxu0 %v1930_v2 }
  0xb4   :  { %1046 = vmatpush2.bf16.msra.mxu1 %v1933_v3  ;;  %1006 = vmatprep.subr.bf16.mxu0 %v1938_v4 }
  0xb5   :  { %1047 = vmatprep.subr.bf16.mxu1 %v1941_v5 }
  0xb7   :  { %1007 = vmatpush2.bf16.msra.mxu0 %v1936_v6 }
  0xb8   :  { %1048 = vmatpush2.bf16.msra.mxu1 %v1939_v7  ;;  %1008 = vmatprep.subr.bf16.mxu0 %v1944_v8 }
  0xb9   :  { %1049 = vmatprep.subr.bf16.mxu1 %v1947_v9  ;;  %v1964_v9 = vld [vmem:[#allocation8 + $0x38] sm:$0xff]  }
  0xbb   :  { %1009 = vmatpush2.bf16.msra.mxu0 %v1942_v10  ;;  %v2129_v10 = vmov 0.0  }
  0xbc   :  { %1050 = vmatpush2.bf16.msra.mxu1 %v1945_v11  ;;  %1664 = vmatprep.subr.bf16.mxu0 %v1948_v16  ;;  %v1965_v11 = vld [vmem:[#allocation8 + $0x30] sm:$0xff]   ;;  %v1970_v16 = vld [vmem:[#allocation8 + $0x8] sm:$0xff]  }
  0xbd   :  { %1704 = vmatprep.subr.bf16.mxu1 %v2129_v10 }
  0xbe   :  { %1011 = vmatmul.mubr.bf16.vlgmr.msra.gmra.mxu0 %v112_v14  ;;  %v1968_v14 = vld [vmem:[#allocation8 + $0x18] sm:$0xff]  }
  0xbf   :  { %1052 = vmatmul.mubr.bf16.vlgmr.msra.gmra.mxu1 %v114_v15  ;;  %1665 = vmatpush3.bf16.msra.mxu0 %v1949_v17  ;;  %v1969_v15 = vld [vmem:[#allocation8 + $0x10] sm:$0xff]   ;;  %v1971_v17 = vld [vmem:[#allocation8] sm:$0xff]  }
  0xc0   :  { %1666 = vmatprep.subr.bf16.mxu0 %v1950_v18  ;;  %1705 = vmatpush3.bf16.msra.mxu1 %v1964_v9  ;;  %v1972_v18 = vld [vmem:[#allocation10 + $0x38] sm:$0xff]  }
  0xc1   :  { %1706 = vmatprep.subr.bf16.mxu1 %v2129_v10  ;;  %1720 = vmatprep.mubr.msk.bf16.mxu1 %vm2130_vm0, %v2129_v10 }
  0xc3   :  { %1667 = vmatpush3.bf16.msra.mxu0 %v1951_v19  ;;  %v1973_v19 = vld [vmem:[#allocation10 + $0x30] sm:$0xff]  }
  0xc4   :  { %1668 = vmatprep.subr.bf16.mxu0 %v1952_v20  ;;  %1707 = vmatpush3.bf16.msra.mxu1 %v1965_v11  ;;  %v1974_v20 = vld [vmem:[#allocation10 + $0x28] sm:$0xff]  }
  0xc5   :  { %1708 = vmatprep.subr.bf16.mxu1 %v2129_v10 }
  0xc7   :  { %1669 = vmatpush3.bf16.msra.mxu0 %v1953_v21  ;;  %v1975_v21 = vld [vmem:[#allocation10 + $0x20] sm:$0xff]  }
  0xc8   :  { %1670 = vmatprep.subr.bf16.mxu0 %v1954_v22  ;;  %1709 = vmatpush3.bf16.msra.mxu1 %v1966_v12  ;;  %v1976_v22 = vld [vmem:[#allocation10 + $0x18] sm:$0xff]  }
  0xc9   :  { %1710 = vmatprep.subr.bf16.mxu1 %v2129_v10 }
  0xcb   :  { %1671 = vmatpush3.bf16.msra.mxu0 %v1955_v23  ;;  %v1977_v23 = vld [vmem:[#allocation10 + $0x10] sm:$0xff]  }
  0xcc   :  { %1672 = vmatprep.subr.bf16.mxu0 %v1956_v24  ;;  %1711 = vmatpush3.bf16.msra.mxu1 %v1967_v13 }
  0xcd   :  { %1712 = vmatprep.subr.bf16.mxu1 %v2129_v10 }
  0xcf   :  { %1673 = vmatpush3.bf16.msra.mxu0 %v1957_v25  ;;  %v1628_v25 = vld [vmem:[%s2225_s4] ss:$0 sm:$0xff] }
  0xd0   :  { %1674 = vmatprep.subr.bf16.mxu0 %v1958_v26  ;;  %1713 = vmatpush3.bf16.msra.mxu1 %v1968_v14 }
  0xd1   :  { %1714 = vmatprep.subr.bf16.mxu1 %v2129_v10 }
  0xd3   :  { %1675 = vmatpush3.bf16.msra.mxu0 %v1959_v27 }
  0xd4   :  { %1676 = vmatprep.subr.bf16.mxu0 %v1960_v28  ;;  %1715 = vmatpush3.bf16.msra.mxu1 %v1969_v15 }
  0xd5   :  { %1716 = vmatprep.subr.bf16.mxu1 %v2129_v10 }
  0xd7   :  { %1677 = vmatpush3.bf16.msra.mxu0 %v1961_v29 }
  0xd8   :  { %1678 = vmatprep.subr.bf16.mxu0 %v1962_v30  ;;  %1717 = vmatpush3.bf16.msra.mxu1 %v1970_v16 }
  0xd9   :  { %1718 = vmatprep.subr.bf16.mxu1 %v2129_v10 }
  0xdb   :  { %1679 = vmatpush3.bf16.msra.mxu0 %v1963_v31 }
  0xdc   :  { %1724 = vmatprep.subr.bf16.mxu0 %v2129_v10  ;;  %1719 = vmatpush3.bf16.msra.mxu1 %v1971_v17 }
 0x13e   :  { %v930_v32 = vpop.f32.mrf.mxu0 }
 0x13f   :  { %v971_v33 = vpop.f32.mrf.mxu1  ;;  %v931_v47 = vadd.f32 %v930_v32, %v249_v45 }
 0x140   :  { %v932_v34 = vpop.f32.mrf.mxu0 }
 0x141   :  { %v973_v35 = vpop.f32.mrf.mxu1  ;;  %v933_v48 = vadd.f32 %v932_v34, %v253_v46  ;;  %v972_v49 = vadd.f32 %v971_v33, %v931_v47  ;;  %v1655_v46 = vld [vmem:[%s2229_s8] ss:$0 sm:$0xff] }
 0x142   :  { %v934_v36 = vpop.f32.mrf.mxu0 }
 0x143   :  { %v975_v37 = vpop.f32.mrf.mxu1  ;;  %v974_v52 = vadd.f32 %v973_v35, %v933_v48  ;;  %v1978_v36 = vld [vmem:[#allocation10 + $0x8] sm:$0xff]  }
 0x144   :  { %v935_v38 = vpop.f32.mrf.mxu0  ;;  %v1979_v37 = vld [vmem:[#allocation10] sm:$0xff]  }
 0x145   :  { %v976_v39 = vpop.f32.mrf.mxu1  ;;  %v1646_v38 = vld [vmem:[%s2227_s6] ss:$0 sm:$0xff]  ;;  %s2092_s6 = scalar_lea.vmem %s1488_s19, 128 }
 0x146   :  { %p2093_p11 = scmp.ne.s32.totalorder %s1488_s19, %s2092_s6  ;;  %p2098_p13 = scmp.lt.s32.totalorder %s2092_s6, %s2092_s6 }
 0x148   :  { %p2099_p0 = por %p2098_p13, %p2097_p12 }
 0x14a   :  { %p2100_p1 = pnand %p2099_p0, %p2093_p11 }
 0x17e   :  { %v1012_v50 = vpop.f32.mrf.mxu0 }
 0x17f   :  { %v1053_v51 = vpop.f32.mrf.mxu1  ;;  %v1013_v53 = vadd.f32 %v1012_v50, %v972_v49 }
 0x180   :  { %v1014_v54 = vpop.f32.mrf.mxu0 }
 0x181   :  { %v1055_v55 = vpop.f32.mrf.mxu1  ;;  %v1054_v56 = vadd.f32 %v1053_v51, %v1013_v53  ;;  %v1015_v57 = vadd.f32 %v1014_v54, %v974_v52 }
 0x182   :  { %v1016_v58 = vpop.f32.mrf.mxu0 }
 0x183   :  { %v1057_v59 = vpop.f32.mrf.mxu1  ;;  %v1626_v60 = vmul.f32 -1.442695, %v1054_v56  ;;  %v1056_v61 = vadd.f32 %v1055_v55, %v1015_v57 }
 0x184   :  { %v1017_v62 = vpop.f32.mrf.mxu0 }
 0x185   :  { %v1058_v63 = vpop.f32.mrf.mxu1  ;;  %1980 = vpow2.f32 %v1626_v60  ;;  %v1627_v0 = vmul.f32 -1.442695, %v1056_v61 }
 0x187   :  { %1982 = vpow2.f32 %v1627_v0 }
 0x192   :  { %v1981_v1 = vpop.eup %1980 }
 0x193   :  { %v1066_v2 = vadd.f32 1.0, %v1981_v1 }
 0x194   :  { %v1983_v3 = vpop.eup %1982 }
 0x195   :  { %v1067_v4 = vadd.f32 1.0, %v1983_v3  ;;  %1984 = vrcp.f32 %v1066_v2 }
 0x197   :  { %1986 = vrcp.f32 %v1067_v4 }
 0x1a2   :  { %v1985_v5 = vpop.eup %1984 }
 0x1a3   :  { %v1072_v8 = vpack.c.bf16 %v1985_v5, %v1985_v5 }
 0x1a4   :  { %v1987_v6 = vpop.eup %1986 }
 0x1a5   :  { %v1073_v7 = vpack.c.bf16 %v1987_v6, %v1987_v6 }
 0x1a7   :  { %1241 = vmatprep.mubr.bf16.mxu0 %v1073_v7 }
 0x1a8   :  { %1242 = vmatmul.mubr.bf16.vlgmr.msra.gmra.mxu0 %v1072_v8 }
 0x1a9   :  { %1740 = vmatprep.mubr.msk.bf16.mxu0 %vm2130_vm0, %v2129_v10  ;;  %1725 = vmatpush3.bf16.msra.mxu0 %v1972_v18 }
 0x1aa   :  { %1726 = vmatprep.subr.bf16.mxu0 %v2129_v10 }
 0x1ad   :  { %1727 = vmatpush3.bf16.msra.mxu0 %v1973_v19 }
 0x1ae   :  { %1728 = vmatprep.subr.bf16.mxu0 %v2129_v10 }
 0x1b1   :  { %1729 = vmatpush3.bf16.msra.mxu0 %v1974_v20 }
 0x1b2   :  { %1730 = vmatprep.subr.bf16.mxu0 %v2129_v10 }
 0x1b5   :  { %1731 = vmatpush3.bf16.msra.mxu0 %v1975_v21 }
 0x1b6   :  { %1732 = vmatprep.subr.bf16.mxu0 %v2129_v10 }
 0x1b9   :  { %1733 = vmatpush3.bf16.msra.mxu0 %v1976_v22 }
 0x1ba   :  { %1734 = vmatprep.subr.bf16.mxu0 %v2129_v10 }
 0x1bd   :  { %1735 = vmatpush3.bf16.msra.mxu0 %v1977_v23 }
 0x1be   :  { %1736 = vmatprep.subr.bf16.mxu0 %v2129_v10 }
 0x1c1   :  { %1737 = vmatpush3.bf16.msra.mxu0 %v1978_v36 }
 0x1c2   :  { %1738 = vmatprep.subr.bf16.mxu0 %v2129_v10 }
 0x1c5   :  { %1739 = vmatpush3.bf16.msra.mxu0 %v1979_v37 }
 0x268   :  { %v1680_v24 = vpop.f32.mrf.mxu0 }
 0x26a   :  { %v1681_v26 = vpop.f32.mrf.mxu0 }
 0x26b   :  { %v1682_v27 = vadd.f32 %v1681_v26, %v1680_v24 }
 0x26c   :  { %v1683_v28 = vpop.f32.mrf.mxu0 }
 0x26d   :  { %v1244_v29 = vadd.f32 %v1682_v27, %v1628_v25 }
 0x26e   :  { %v1684_v30 = vpop.f32.mrf.mxu0 }
 0x26f   :  { %v1645_v31 = vmul.f32 -1.442695, %v1244_v29 }
 0x271   :  { %1988 = vpow2.f32 %v1645_v31 }
 0x27e   :  { %v1989_v32 = vpop.eup %1988 }
 0x27f   :  { %v1252_v33 = vadd.f32 1.0, %v1989_v32 }
 0x281   :  { %1990 = vrcp.f32 %v1252_v33 }
 0x28e   :  { %v1991_v34 = vpop.eup %1990 }
 0x28f   :  { %v1255_v35 = vpack.c.bf16 %v1991_v34, %v1991_v34 }
 0x291   :  { %1721 = vmatmul.mubr.bf16.vlgmr.msra.gmra.mxu1 %v1255_v35 }
 0x351   :  { %v1361_v39 = vpop.f32.mrf.mxu1 }
 0x352   :  { %v1362_v40 = vadd.f32 %v1646_v38, %v1361_v39 }
 0x353   :  { %v1722_v41 = vpop.f32.mrf.mxu1 }
 0x354   :  { %v1367_v42 = vmax.f32 %v1362_v40, 0.0 }
 0x355   :  { %v1364_v43 = vpop.f32.mrf.mxu1 }
 0x356   :  { %v1368_v44 = vpack.c.bf16 %v1367_v42, %v1367_v42 }
 0x357   :  { %v1723_v45 = vpop.f32.mrf.mxu1 }
 0x358   :  { %1741 = vmatmul.mubr.bf16.vlgmr.msra.gmra.mxu0 %v1368_v44 }
 0x418   :  { %v1474_v47 = vpop.f32.mrf.mxu0 }
 0x419   :  { %v1475_v48 = vadd.f32 %v1655_v46, %v1474_v47 }
 0x41a   :  { %v1742_v49 = vpop.f32.mrf.mxu0 }
 0x41b   :  { %1480 = vst [vmem:[#allocation11] sm:$0xff] %v1475_v48 }
 0x41c   :  { %v1477_v50 = vpop.f32.mrf.mxu0 }
 0x41d   :  { %2103 = shalt.err (!%p2100_p1)
}
 0x41e   :  { %1490 = dma.vmem_to_hbm [thread:$0]  %s1488_s19, 128, %s2230_s9, [#allocation4]   ;;  %v1743_v51 = vpop.f32.mrf.mxu0 }
 0x41f   :  { %2118 = dma.done.wait [#allocation4], 128  }
 0x420   :  { %2119 = vsyncadd [#allocation4], 4294967168 }
 0x421   :  { %1494 = vsyncpa [#allocation3], 1 }
 0x422   :  { %1495 = vsyncpa [#allocation6], 1 }
 0x423   :  { %1496 = vsyncpa [#allocation9], 1 }
 0x424   :  { %1497 = vsyncpa [#allocation4], 1 }

</bundles_post_ra>
